<compile_context>
chip_gen: v5e
topology: v5e:2x2
jax: 0.10.0
libtpu: 0.0.40
codegen_flags: <defaults>
</compile_context>

<pallas_src>
import functools

import jax
import jax.numpy as jnp
from jax.experimental import pallas as pl
from jax.experimental.pallas import tpu as pltpu


def _attention_block_kernel(
    x1_ref, x2_ref,
    s1_ref, b1_ref, wenc_ref, sel_ref,
    s2_ref, b2_ref, wdec_ref, bed_ref,
    s3_ref, b3_ref, watt_ref, ba_ref,
    out_ref,
    *, H, W, Hh, Wh):
  f32 = jnp.float32
  bf16 = jnp.bfloat16

  def shift_lanes(a, off):
    """b[:, p] = a[:, p + off], zero-filled outside [0, a.shape[1])."""
    if off == 0:
      return a
    c = a.shape[0]
    z = jnp.zeros((c, abs(off)), a.dtype)
    if off > 0:
      return jnp.concatenate([a[:, off:], z], axis=1)
    return jnp.concatenate([z, a[:, :off]], axis=1)

  def conv3x3(act, w_ref, h, w):
    """act: (C, h*w) bf16, w_ref: (Cout, 9*C) bf16 -> (Cout, h*w) f32.

    3x3 / pad=1 conv as ONE MXU matmul: the 9 shifted+border-masked taps are
    stacked along the contraction dim (tap-major, channel-minor) to match the
    (Cout, 9*C) weight layout prepared in the wrapper.
    """
    col = jax.lax.broadcasted_iota(jnp.int32, (1, h * w), 1) % w
    taps = []
    for dy in (-1, 0, 1):
      for dx in (-1, 0, 1):
        t = shift_lanes(act, dy * w + dx)
        if dx == 1:                          # source column must be <= w-1
          t = jnp.where(col < (w - 1), t, 0.0)
        elif dx == -1:                       # source column must be >= 0
          t = jnp.where(col >= 1, t, 0.0)
        taps.append(t)
    stack = jnp.concatenate(taps, axis=0)                         # (9*C, h*w)
    return jnp.dot(w_ref[...], stack, preferred_element_type=f32)

  # ---------------- encoder: BN+ReLU -> 3x3 conv -> 2x2 maxpool ------------
  x1 = x1_ref[0].astype(f32)                                      # (Cin, H*W)
  act1 = jnp.maximum(x1 * s1_ref[...] + b1_ref[...], 0.0).astype(bf16)
  conv_e = conv3x3(act1, wenc_ref, H, W)                          # (Cout, H*W)
  # 2x2 max pool: pairwise max along x (shift by 1) and y (shift by W), then
  # compact the (2y, 2x) lanes to (Hh*Wh) with a 0/1 selection matmul (MXU).
  hmax = jnp.maximum(conv_e, shift_lanes(conv_e, 1))
  vmax = jnp.maximum(hmax, shift_lanes(hmax, W))
  pooled = jnp.dot(vmax, sel_ref[...], preferred_element_type=f32)

  # ---------------- decoder: BN+ReLU -> 3x3 conv ----------------------------
  x2 = x2_ref[0].astype(f32)                                      # (Cout, Hh*Wh)
  act2 = jnp.maximum(x2 * s2_ref[...] + b2_ref[...], 0.0).astype(bf16)
  conv_d = conv3x3(act2, wdec_ref, Hh, Wh)

  # ------------- fuse + attention (BN+ReLU -> 1x1 conv -> gate) -------------
  # Both per-channel conv biases commute with the max pool, so they were summed
  # in the wrapper and are added once here.
  fused = pooled + conv_d + bed_ref[...]
  act3 = jnp.maximum(fused * s3_ref[...] + b3_ref[...], 0.0)
  att = jnp.dot(watt_ref[...], act3, preferred_element_type=f32) + ba_ref[...]
  out_ref[0] = (att * x2).astype(out_ref.dtype)                   # broadcast C


def _bcast_spec(shape):
  nd = len(shape)
  return pl.BlockSpec(shape, lambda b, nd=nd: (0,) * nd)


def attention_block_pallas(x1_nchw, x2_nchw, params):
  """x1: (B, Cin, H, W), x2: (B, Cout, H//2, W//2) -> (B, Cout, H//2, W//2)."""
  B, Cin, H, W = x1_nchw.shape
  _, Cout, Hh, Wh = x2_nchw.shape
  HW, HWh = H * W, Hh * Wh

  # NCHW already has spatial contiguous -> lane-dense (C, H*W) is a free reshape.
  x1 = x1_nchw.reshape(B, Cin, HW)
  x2 = x2_nchw.reshape(B, Cout, HWh)

  # Fold BN (inference) into per-channel scale/bias, shaped (C, 1) for
  # lane-broadcast against (C, H*W).
  s1, b1 = (a.reshape(Cin, 1) for a in params["bn1"])
  s2, b2 = (a.reshape(Cout, 1) for a in params["bn2"])
  s3, b3 = (a.reshape(Cout, 1) for a in params["bn3"])

  # OIHW -> (O, Ky, Kx, I) -> (O, 9*I): column index k*Cin + cin matches the
  # tap-major stack built in-kernel.  bf16 operands for the MXU (f32 accum).
  w_enc = jnp.transpose(params["w_enc"], (0, 2, 3, 1)).reshape(Cout, 9 * Cin)
  w_dec = jnp.transpose(params["w_dec"], (0, 2, 3, 1)).reshape(Cout, 9 * Cout)
  w_enc = w_enc.astype(jnp.bfloat16)
  w_dec = w_dec.astype(jnp.bfloat16)
  # Encoder + decoder conv biases, combined (both are per-channel constants;
  # the encoder one commutes with the 2x2 max pool).
  b_ed = (params["b_enc"] + params["b_dec"]).reshape(Cout, 1)
  w_att = params["w_att"].reshape(1, Cout)
  ba = params["b_att"].reshape(1, 1)

  # 0/1 selection matrix: picks lane 2*yo*W + 2*xo for pooled index yo*Wh + xo.
  po = jnp.arange(HWh, dtype=jnp.int32)
  src = (2 * (po // Wh)) * W + 2 * (po % Wh)
  sel = (jnp.arange(HW, dtype=jnp.int32)[:, None] == src[None, :]).astype(
      jnp.float32)

  kernel = functools.partial(_attention_block_kernel, H=H, W=W, Hh=Hh, Wh=Wh)

  in_specs = [
      pl.BlockSpec((1, Cin, HW), lambda b: (b, 0, 0)),      # x1
      pl.BlockSpec((1, Cout, HWh), lambda b: (b, 0, 0)),    # x2
      _bcast_spec(s1.shape), _bcast_spec(b1.shape),
      _bcast_spec(w_enc.shape), _bcast_spec(sel.shape),
      _bcast_spec(s2.shape), _bcast_spec(b2.shape),
      _bcast_spec(w_dec.shape), _bcast_spec(b_ed.shape),
      _bcast_spec(s3.shape), _bcast_spec(b3.shape),
      _bcast_spec(w_att.shape), _bcast_spec(ba.shape),
  ]

  out = pl.pallas_call(
      kernel,
      out_shape=jax.ShapeDtypeStruct((B, Cout, HWh), x2.dtype),
      grid=(B,),
      in_specs=in_specs,
      out_specs=pl.BlockSpec((1, Cout, HWh), lambda b: (b, 0, 0)),
      compiler_params=pltpu.CompilerParams(
          dimension_semantics=("parallel",)),   # batch steps are independent
  )(x1, x2, s1, b1, w_enc, sel, s2, b2, w_dec, b_ed, s3, b3, w_att, ba)

  return out.reshape(B, Cout, Hh, Wh)


# ------------------------- deterministic parameter init ----------------------
def init_params(key, cin, cout):
  keys = jax.random.split(key, 9)
  eps = 1e-5

  def bn_folded(k, c):
    k1, k2, k3, k4 = jax.random.split(k, 4)
    gamma = 1.0 + 0.1 * jax.random.normal(k1, (c,), jnp.float32)
    beta = 0.1 * jax.random.normal(k2, (c,), jnp.float32)
    mean = 0.1 * jax.random.normal(k3, (c,), jnp.float32)
    var = jax.random.uniform(k4, (c,), jnp.float32, minval=0.5, maxval=1.5)
    scale = gamma * jax.lax.rsqrt(var + eps)
    return scale, beta - mean * scale

  return {
      "bn1": bn_folded(keys[0], cin),
      "w_enc": 0.1 * jax.random.normal(keys[1], (cout, cin, 3, 3), jnp.float32),
      "b_enc": 0.1 * jax.random.normal(keys[2], (cout,), jnp.float32),
      "bn2": bn_folded(keys[3], cout),
      "w_dec": 0.1 * jax.random.normal(keys[4], (cout, cout, 3, 3), jnp.float32),
      "b_dec": 0.1 * jax.random.normal(keys[5], (cout,), jnp.float32),
      "bn3": bn_folded(keys[6], cout),
      "w_att": 0.1 * jax.random.normal(keys[7], (1, cout, 1, 1), jnp.float32),
      "b_att": 0.1 * jax.random.normal(keys[8], (1,), jnp.float32),
  }


# ------------------------- pure-JAX reference (NCHW, like PyTorch) -----------
def attention_block_reference(x1, x2, params):
  def bn_relu(x, sb):
    s, b = sb
    return jnp.maximum(x * s.reshape(1, -1, 1, 1) + b.reshape(1, -1, 1, 1), 0.0)

  def conv(x, w, b, pad):
    y = jax.lax.conv_general_dilated(
        x, w, window_strides=(1, 1), padding=((pad, pad), (pad, pad)),
        dimension_numbers=("NCHW", "OIHW", "NCHW"),
        precision=jax.lax.Precision.HIGHEST)
    return y + b.reshape(1, -1, 1, 1)

  e = conv(bn_relu(x1, params["bn1"]), params["w_enc"], params["b_enc"], 1)
  B, C, H, W = e.shape
  e = e.reshape(B, C, H // 2, 2, W // 2, 2).max(axis=(3, 5))      # MaxPool2d(2,2)
  d = conv(bn_relu(x2, params["bn2"]), params["w_dec"], params["b_dec"], 1)
  fused = e + d
  att = conv(bn_relu(fused, params["bn3"]), params["w_att"], params["b_att"], 0)
  return att * x2


if __name__ == "__main__":
  # TODO(synk): BatchNorm2d is implemented with inference-mode (running) stats;
  # PyTorch training-mode batch statistics are not reproduced.
  B, Cin, Cout, H, W = 2, 4, 8, 16, 16
  key = jax.random.PRNGKey(0)
  k1, k2, kp = jax.random.split(key, 3)
  x1 = jax.random.normal(k1, (B, Cin, H, W), jnp.float32)
  x2 = jax.random.normal(k2, (B, Cout, H // 2, W // 2), jnp.float32)
  params = init_params(kp, Cin, Cout)

  out = attention_block_pallas(x1, x2, params)
  out = jax.block_until_ready(out)

  ref = attention_block_reference(x1, x2, params)
  assert out.shape == ref.shape == (B, Cout, H // 2, W // 2)
  # Tolerance accounts for bf16 conv operands on the MXU (f32 accumulation).
  max_err = float(jnp.max(jnp.abs(out - ref)))
  if not (max_err < 5e-2):
    raise AssertionError(f"Pallas output mismatch vs reference, max abs err={max_err}")
  print("KERNEL_OK")
</pallas_src>

<mosaic_0001>
module attributes {stable_mosaic.version = 11 : i64} {
  func.func @_attention_block_kernel(%arg0: i32, %arg1: memref<1x4x256xf32, #tpu.memory_space<vmem>>, %arg2: memref<1x8x64xf32, #tpu.memory_space<vmem>>, %arg3: memref<4x1xf32, #tpu.memory_space<vmem>>, %arg4: memref<4x1xf32, #tpu.memory_space<vmem>>, %arg5: memref<8x36xbf16, #tpu.memory_space<vmem>>, %arg6: memref<256x64xf32, #tpu.memory_space<vmem>>, %arg7: memref<8x1xf32, #tpu.memory_space<vmem>>, %arg8: memref<8x1xf32, #tpu.memory_space<vmem>>, %arg9: memref<8x72xbf16, #tpu.memory_space<vmem>>, %arg10: memref<8x1xf32, #tpu.memory_space<vmem>>, %arg11: memref<8x1xf32, #tpu.memory_space<vmem>>, %arg12: memref<8x1xf32, #tpu.memory_space<vmem>>, %arg13: memref<1x8xf32, #tpu.memory_space<vmem>>, %arg14: memref<1x1xf32, #tpu.memory_space<vmem>>, %arg15: memref<1x8x64xf32, #tpu.memory_space<vmem>>) attributes {dimension_semantics = [#tpu.dimension_semantics<parallel>], iteration_bounds = array<i64: 2>, scalar_prefetch = 0 : i64, scratch_operands = 0 : i64, tpu.core_type = #tpu.core_type<tc>, window_params = [{transform_indices = @transform_0, window_bounds = array<i64: 1, 4, 256>}, {transform_indices = @transform_1, window_bounds = array<i64: 1, 8, 64>}, {pipeline_mode = #tpu.pipeline_mode<synchronous>, transform_indices = @transform_2, window_bounds = array<i64: 4, 1>}, {pipeline_mode = #tpu.pipeline_mode<synchronous>, transform_indices = @transform_3, window_bounds = array<i64: 4, 1>}, {pipeline_mode = #tpu.pipeline_mode<synchronous>, transform_indices = @transform_4, window_bounds = array<i64: 8, 36>}, {pipeline_mode = #tpu.pipeline_mode<synchronous>, transform_indices = @transform_5, window_bounds = array<i64: 256, 64>}, {pipeline_mode = #tpu.pipeline_mode<synchronous>, transform_indices = @transform_6, window_bounds = array<i64: 8, 1>}, {pipeline_mode = #tpu.pipeline_mode<synchronous>, transform_indices = @transform_7, window_bounds = array<i64: 8, 1>}, {pipeline_mode = #tpu.pipeline_mode<synchronous>, transform_indices = @transform_8, window_bounds = array<i64: 8, 72>}, {pipeline_mode = #tpu.pipeline_mode<synchronous>, transform_indices = @transform_9, window_bounds = array<i64: 8, 1>}, {pipeline_mode = #tpu.pipeline_mode<synchronous>, transform_indices = @transform_10, window_bounds = array<i64: 8, 1>}, {pipeline_mode = #tpu.pipeline_mode<synchronous>, transform_indices = @transform_11, window_bounds = array<i64: 8, 1>}, {pipeline_mode = #tpu.pipeline_mode<synchronous>, transform_indices = @transform_12, window_bounds = array<i64: 1, 8>}, {pipeline_mode = #tpu.pipeline_mode<synchronous>, transform_indices = @transform_13, window_bounds = array<i64: 1, 1>}, {transform_indices = @transform_14, window_bounds = array<i64: 1, 8, 64>}]} {
    %c0 = arith.constant 0 : index
    %c0_0 = arith.constant 0 : index
    %c0_1 = arith.constant 0 : index
    %0 = vector.load %arg1[%c0, %c0_0, %c0_1] : memref<1x4x256xf32, #tpu.memory_space<vmem>>, vector<1x4x256xf32>
    %1 = vector.shape_cast %0 : vector<1x4x256xf32> to vector<4x256xf32>
    %c0_2 = arith.constant 0 : index
    %c0_3 = arith.constant 0 : index
    %2 = vector.load %arg3[%c0_2, %c0_3] : memref<4x1xf32, #tpu.memory_space<vmem>>, vector<4x1xf32>
    %3 = vector.broadcast %2 : vector<4x1xf32> to vector<4x256xf32>
    %4 = arith.mulf %1, %3 : vector<4x256xf32>
    %c0_4 = arith.constant 0 : index
    %c0_5 = arith.constant 0 : index
    %5 = vector.load %arg4[%c0_4, %c0_5] : memref<4x1xf32, #tpu.memory_space<vmem>>, vector<4x1xf32>
    %6 = vector.broadcast %5 : vector<4x1xf32> to vector<4x256xf32>
    %7 = arith.addf %4, %6 : vector<4x256xf32>
    %cst = arith.constant 0.000000e+00 : f32
    %8 = vector.broadcast %cst : f32 to vector<4x256xf32>
    %9 = arith.maximumf %7, %8 : vector<4x256xf32>
    %10 = arith.truncf %9 : vector<4x256xf32> to vector<4x256xbf16>
    %11 = tpu.iota {dimensions = array<i32: 1>} : vector<1x256xi32>
    %c16_i32 = arith.constant 16 : i32
    %c0_i32 = arith.constant 0 : i32
    %12 = arith.cmpi eq, %c16_i32, %c0_i32 : i32
    %c1_i32 = arith.constant 1 : i32
    %13 = arith.select %12, %c1_i32, %c16_i32 : i32
    %14 = vector.broadcast %13 : i32 to vector<1x256xi32>
    %15 = arith.remsi %11, %14 : vector<1x256xi32>
    %c0_i32_6 = arith.constant 0 : i32
    %16 = vector.broadcast %c0_i32_6 : i32 to vector<1x256xi32>
    %17 = arith.cmpi ne, %15, %16 : vector<1x256xi32>
    %c0_i32_7 = arith.constant 0 : i32
    %18 = vector.broadcast %c0_i32_7 : i32 to vector<1x256xi32>
    %19 = arith.cmpi slt, %15, %18 : vector<1x256xi32>
    %c0_i32_8 = arith.constant 0 : i32
    %20 = arith.cmpi slt, %13, %c0_i32_8 : i32
    %21 = vector.broadcast %20 : i1 to vector<1x256xi1>
    %22 = vector.broadcast %21 : vector<1x256xi1> to vector<1x256xi1>
    %23 = arith.xori %19, %22 : vector<1x256xi1>
    %24 = arith.andi %23, %17 : vector<1x256xi1>
    %25 = vector.broadcast %13 : i32 to vector<1x256xi32>
    %26 = arith.addi %15, %25 : vector<1x256xi32>
    %27 = arith.select %24, %26, %15 : vector<1x256xi1>, vector<1x256xi32>
    %cst_9 = arith.constant 0.000000e+00 : bf16
    %28 = vector.broadcast %cst_9 : bf16 to vector<4x17xbf16>
    %29 = vector.extract_strided_slice %10 {offsets = [0, 0], sizes = [4, 239], strides = [1, 1]} : vector<4x256xbf16> to vector<4x239xbf16>
    %30 = tpu.concatenate %28, %29 in 1 : vector<4x17xbf16>, vector<4x239xbf16> -> vector<4x256xbf16>
    %c1_i32_10 = arith.constant 1 : i32
    %31 = vector.broadcast %c1_i32_10 : i32 to vector<1x256xi32>
    %32 = arith.cmpi sge, %27, %31 : vector<1x256xi32>
    %cst_11 = arith.constant 0.000000e+00 : f32
    %33 = arith.truncf %cst_11 : f32 to bf16
    %34 = vector.shape_cast %32 : vector<1x256xi1> to vector<1x256xi1>
    %35 = vector.broadcast %34 : vector<1x256xi1> to vector<4x256xi1>
    %36 = vector.broadcast %33 : bf16 to vector<4x256xbf16>
    %37 = arith.select %35, %30, %36 : vector<4x256xi1>, vector<4x256xbf16>
    %cst_12 = arith.constant 0.000000e+00 : bf16
    %38 = vector.broadcast %cst_12 : bf16 to vector<4x16xbf16>
    %39 = vector.extract_strided_slice %10 {offsets = [0, 0], sizes = [4, 240], strides = [1, 1]} : vector<4x256xbf16> to vector<4x240xbf16>
    %40 = tpu.concatenate %38, %39 in 1 : vector<4x16xbf16>, vector<4x240xbf16> -> vector<4x256xbf16>
    %cst_13 = arith.constant 0.000000e+00 : bf16
    %41 = vector.broadcast %cst_13 : bf16 to vector<4x15xbf16>
    %42 = vector.extract_strided_slice %10 {offsets = [0, 0], sizes = [4, 241], strides = [1, 1]} : vector<4x256xbf16> to vector<4x241xbf16>
    %43 = tpu.concatenate %41, %42 in 1 : vector<4x15xbf16>, vector<4x241xbf16> -> vector<4x256xbf16>
    %c15_i32 = arith.constant 15 : i32
    %44 = vector.broadcast %c15_i32 : i32 to vector<1x256xi32>
    %45 = arith.cmpi slt, %27, %44 : vector<1x256xi32>
    %cst_14 = arith.constant 0.000000e+00 : f32
    %46 = arith.truncf %cst_14 : f32 to bf16
    %47 = vector.shape_cast %45 : vector<1x256xi1> to vector<1x256xi1>
    %48 = vector.broadcast %47 : vector<1x256xi1> to vector<4x256xi1>
    %49 = vector.broadcast %46 : bf16 to vector<4x256xbf16>
    %50 = arith.select %48, %43, %49 : vector<4x256xi1>, vector<4x256xbf16>
    %cst_15 = arith.constant 0.000000e+00 : bf16
    %51 = vector.broadcast %cst_15 : bf16 to vector<4x1xbf16>
    %52 = vector.extract_strided_slice %10 {offsets = [0, 0], sizes = [4, 255], strides = [1, 1]} : vector<4x256xbf16> to vector<4x255xbf16>
    %53 = tpu.concatenate %51, %52 in 1 : vector<4x1xbf16>, vector<4x255xbf16> -> vector<4x256xbf16>
    %c1_i32_16 = arith.constant 1 : i32
    %54 = vector.broadcast %c1_i32_16 : i32 to vector<1x256xi32>
    %55 = arith.cmpi sge, %27, %54 : vector<1x256xi32>
    %cst_17 = arith.constant 0.000000e+00 : f32
    %56 = arith.truncf %cst_17 : f32 to bf16
    %57 = vector.shape_cast %55 : vector<1x256xi1> to vector<1x256xi1>
    %58 = vector.broadcast %57 : vector<1x256xi1> to vector<4x256xi1>
    %59 = vector.broadcast %56 : bf16 to vector<4x256xbf16>
    %60 = arith.select %58, %53, %59 : vector<4x256xi1>, vector<4x256xbf16>
    %cst_18 = arith.constant 0.000000e+00 : bf16
    %61 = vector.broadcast %cst_18 : bf16 to vector<4x1xbf16>
    %62 = vector.extract_strided_slice %10 {offsets = [0, 1], sizes = [4, 255], strides = [1, 1]} : vector<4x256xbf16> to vector<4x255xbf16>
    %63 = tpu.concatenate %62, %61 in 1 : vector<4x255xbf16>, vector<4x1xbf16> -> vector<4x256xbf16>
    %c15_i32_19 = arith.constant 15 : i32
    %64 = vector.broadcast %c15_i32_19 : i32 to vector<1x256xi32>
    %65 = arith.cmpi slt, %27, %64 : vector<1x256xi32>
    %cst_20 = arith.constant 0.000000e+00 : f32
    %66 = arith.truncf %cst_20 : f32 to bf16
    %67 = vector.shape_cast %65 : vector<1x256xi1> to vector<1x256xi1>
    %68 = vector.broadcast %67 : vector<1x256xi1> to vector<4x256xi1>
    %69 = vector.broadcast %66 : bf16 to vector<4x256xbf16>
    %70 = arith.select %68, %63, %69 : vector<4x256xi1>, vector<4x256xbf16>
    %cst_21 = arith.constant 0.000000e+00 : bf16
    %71 = vector.broadcast %cst_21 : bf16 to vector<4x15xbf16>
    %72 = vector.extract_strided_slice %10 {offsets = [0, 15], sizes = [4, 241], strides = [1, 1]} : vector<4x256xbf16> to vector<4x241xbf16>
    %73 = tpu.concatenate %72, %71 in 1 : vector<4x241xbf16>, vector<4x15xbf16> -> vector<4x256xbf16>
    %c1_i32_22 = arith.constant 1 : i32
    %74 = vector.broadcast %c1_i32_22 : i32 to vector<1x256xi32>
    %75 = arith.cmpi sge, %27, %74 : vector<1x256xi32>
    %cst_23 = arith.constant 0.000000e+00 : f32
    %76 = arith.truncf %cst_23 : f32 to bf16
    %77 = vector.shape_cast %75 : vector<1x256xi1> to vector<1x256xi1>
    %78 = vector.broadcast %77 : vector<1x256xi1> to vector<4x256xi1>
    %79 = vector.broadcast %76 : bf16 to vector<4x256xbf16>
    %80 = arith.select %78, %73, %79 : vector<4x256xi1>, vector<4x256xbf16>
    %cst_24 = arith.constant 0.000000e+00 : bf16
    %81 = vector.broadcast %cst_24 : bf16 to vector<4x16xbf16>
    %82 = vector.extract_strided_slice %10 {offsets = [0, 16], sizes = [4, 240], strides = [1, 1]} : vector<4x256xbf16> to vector<4x240xbf16>
    %83 = tpu.concatenate %82, %81 in 1 : vector<4x240xbf16>, vector<4x16xbf16> -> vector<4x256xbf16>
    %cst_25 = arith.constant 0.000000e+00 : bf16
    %84 = vector.broadcast %cst_25 : bf16 to vector<4x17xbf16>
    %85 = vector.extract_strided_slice %10 {offsets = [0, 17], sizes = [4, 239], strides = [1, 1]} : vector<4x256xbf16> to vector<4x239xbf16>
    %86 = tpu.concatenate %85, %84 in 1 : vector<4x239xbf16>, vector<4x17xbf16> -> vector<4x256xbf16>
    %c15_i32_26 = arith.constant 15 : i32
    %87 = vector.broadcast %c15_i32_26 : i32 to vector<1x256xi32>
    %88 = arith.cmpi slt, %27, %87 : vector<1x256xi32>
    %cst_27 = arith.constant 0.000000e+00 : f32
    %89 = arith.truncf %cst_27 : f32 to bf16
    %90 = vector.shape_cast %88 : vector<1x256xi1> to vector<1x256xi1>
    %91 = vector.broadcast %90 : vector<1x256xi1> to vector<4x256xi1>
    %92 = vector.broadcast %89 : bf16 to vector<4x256xbf16>
    %93 = arith.select %91, %86, %92 : vector<4x256xi1>, vector<4x256xbf16>
    %94 = tpu.concatenate %37, %40, %50, %60, %10, %70, %80, %83, %93 in 0 : vector<4x256xbf16>, vector<4x256xbf16>, vector<4x256xbf16>, vector<4x256xbf16>, vector<4x256xbf16>, vector<4x256xbf16>, vector<4x256xbf16>, vector<4x256xbf16>, vector<4x256xbf16> -> vector<36x256xbf16>
    %c0_28 = arith.constant 0 : index
    %c0_29 = arith.constant 0 : index
    %95 = vector.load %arg5[%c0_28, %c0_29] : memref<8x36xbf16, #tpu.memory_space<vmem>>, vector<8x36xbf16>
    %cst_30 = arith.constant dense<0.000000e+00> : vector<8x256xf32>
    %96 = tpu.matmul %95, %94, %cst_30 {dimension_numbers = #tpu.dot_dimension_numbers<[1], [0], [0], [1], [0, 0, 1, 1], [], []>} : vector<8x36xbf16>, vector<36x256xbf16>, vector<8x256xf32> -> vector<8x256xf32>
    %cst_31 = arith.constant 0.000000e+00 : f32
    %97 = vector.broadcast %cst_31 : f32 to vector<8x1xf32>
    %98 = vector.extract_strided_slice %96 {offsets = [0, 1], sizes = [8, 255], strides = [1, 1]} : vector<8x256xf32> to vector<8x255xf32>
    %99 = tpu.concatenate %98, %97 in 1 : vector<8x255xf32>, vector<8x1xf32> -> vector<8x256xf32>
    %100 = arith.maximumf %96, %99 : vector<8x256xf32>
    %cst_32 = arith.constant 0.000000e+00 : f32
    %101 = vector.broadcast %cst_32 : f32 to vector<8x16xf32>
    %102 = vector.extract_strided_slice %100 {offsets = [0, 16], sizes = [8, 240], strides = [1, 1]} : vector<8x256xf32> to vector<8x240xf32>
    %103 = tpu.concatenate %102, %101 in 1 : vector<8x240xf32>, vector<8x16xf32> -> vector<8x256xf32>
    %104 = arith.maximumf %100, %103 : vector<8x256xf32>
    %c0_33 = arith.constant 0 : index
    %c0_34 = arith.constant 0 : index
    %105 = vector.load %arg6[%c0_33, %c0_34] : memref<256x64xf32, #tpu.memory_space<vmem>>, vector<256x64xf32>
    %cst_35 = arith.constant dense<0.000000e+00> : vector<8x64xf32>
    %106 = tpu.matmul %104, %105, %cst_35 {dimension_numbers = #tpu.dot_dimension_numbers<[1], [0], [0], [1], [0, 0, 1, 1], [], []>} : vector<8x256xf32>, vector<256x64xf32>, vector<8x64xf32> -> vector<8x64xf32>
    %c0_36 = arith.constant 0 : index
    %c0_37 = arith.constant 0 : index
    %c0_38 = arith.constant 0 : index
    %107 = vector.load %arg2[%c0_36, %c0_37, %c0_38] : memref<1x8x64xf32, #tpu.memory_space<vmem>>, vector<1x8x64xf32>
    %108 = vector.shape_cast %107 : vector<1x8x64xf32> to vector<8x64xf32>
    %c0_39 = arith.constant 0 : index
    %c0_40 = arith.constant 0 : index
    %109 = vector.load %arg7[%c0_39, %c0_40] : memref<8x1xf32, #tpu.memory_space<vmem>>, vector<8x1xf32>
    %110 = vector.broadcast %109 : vector<8x1xf32> to vector<8x64xf32>
    %111 = arith.mulf %108, %110 : vector<8x64xf32>
    %c0_41 = arith.constant 0 : index
    %c0_42 = arith.constant 0 : index
    %112 = vector.load %arg8[%c0_41, %c0_42] : memref<8x1xf32, #tpu.memory_space<vmem>>, vector<8x1xf32>
    %113 = vector.broadcast %112 : vector<8x1xf32> to vector<8x64xf32>
    %114 = arith.addf %111, %113 : vector<8x64xf32>
    %cst_43 = arith.constant 0.000000e+00 : f32
    %115 = vector.broadcast %cst_43 : f32 to vector<8x64xf32>
    %116 = arith.maximumf %114, %115 : vector<8x64xf32>
    %117 = arith.truncf %116 : vector<8x64xf32> to vector<8x64xbf16>
    %118 = tpu.iota {dimensions = array<i32: 1>} : vector<1x64xi32>
    %c8_i32 = arith.constant 8 : i32
    %c0_i32_44 = arith.constant 0 : i32
    %119 = arith.cmpi eq, %c8_i32, %c0_i32_44 : i32
    %c1_i32_45 = arith.constant 1 : i32
    %120 = arith.select %119, %c1_i32_45, %c8_i32 : i32
    %121 = vector.broadcast %120 : i32 to vector<1x64xi32>
    %122 = arith.remsi %118, %121 : vector<1x64xi32>
    %c0_i32_46 = arith.constant 0 : i32
    %123 = vector.broadcast %c0_i32_46 : i32 to vector<1x64xi32>
    %124 = arith.cmpi ne, %122, %123 : vector<1x64xi32>
    %c0_i32_47 = arith.constant 0 : i32
    %125 = vector.broadcast %c0_i32_47 : i32 to vector<1x64xi32>
    %126 = arith.cmpi slt, %122, %125 : vector<1x64xi32>
    %c0_i32_48 = arith.constant 0 : i32
    %127 = arith.cmpi slt, %120, %c0_i32_48 : i32
    %128 = vector.broadcast %127 : i1 to vector<1x64xi1>
    %129 = vector.broadcast %128 : vector<1x64xi1> to vector<1x64xi1>
    %130 = arith.xori %126, %129 : vector<1x64xi1>
    %131 = arith.andi %130, %124 : vector<1x64xi1>
    %132 = vector.broadcast %120 : i32 to vector<1x64xi32>
    %133 = arith.addi %122, %132 : vector<1x64xi32>
    %134 = arith.select %131, %133, %122 : vector<1x64xi1>, vector<1x64xi32>
    %cst_49 = arith.constant 0.000000e+00 : bf16
    %135 = vector.broadcast %cst_49 : bf16 to vector<8x9xbf16>
    %136 = vector.extract_strided_slice %117 {offsets = [0, 0], sizes = [8, 55], strides = [1, 1]} : vector<8x64xbf16> to vector<8x55xbf16>
    %137 = tpu.concatenate %135, %136 in 1 : vector<8x9xbf16>, vector<8x55xbf16> -> vector<8x64xbf16>
    %c1_i32_50 = arith.constant 1 : i32
    %138 = vector.broadcast %c1_i32_50 : i32 to vector<1x64xi32>
    %139 = arith.cmpi sge, %134, %138 : vector<1x64xi32>
    %cst_51 = arith.constant 0.000000e+00 : f32
    %140 = arith.truncf %cst_51 : f32 to bf16
    %141 = vector.shape_cast %139 : vector<1x64xi1> to vector<1x64xi1>
    %142 = vector.broadcast %141 : vector<1x64xi1> to vector<8x64xi1>
    %143 = vector.broadcast %140 : bf16 to vector<8x64xbf16>
    %144 = arith.select %142, %137, %143 : vector<8x64xi1>, vector<8x64xbf16>
    %cst_52 = arith.constant 0.000000e+00 : bf16
    %145 = vector.broadcast %cst_52 : bf16 to vector<8x8xbf16>
    %146 = vector.extract_strided_slice %117 {offsets = [0, 0], sizes = [8, 56], strides = [1, 1]} : vector<8x64xbf16> to vector<8x56xbf16>
    %147 = tpu.concatenate %145, %146 in 1 : vector<8x8xbf16>, vector<8x56xbf16> -> vector<8x64xbf16>
    %cst_53 = arith.constant 0.000000e+00 : bf16
    %148 = vector.broadcast %cst_53 : bf16 to vector<8x7xbf16>
    %149 = vector.extract_strided_slice %117 {offsets = [0, 0], sizes = [8, 57], strides = [1, 1]} : vector<8x64xbf16> to vector<8x57xbf16>
    %150 = tpu.concatenate %148, %149 in 1 : vector<8x7xbf16>, vector<8x57xbf16> -> vector<8x64xbf16>
    %c7_i32 = arith.constant 7 : i32
    %151 = vector.broadcast %c7_i32 : i32 to vector<1x64xi32>
    %152 = arith.cmpi slt, %134, %151 : vector<1x64xi32>
    %cst_54 = arith.constant 0.000000e+00 : f32
    %153 = arith.truncf %cst_54 : f32 to bf16
    %154 = vector.shape_cast %152 : vector<1x64xi1> to vector<1x64xi1>
    %155 = vector.broadcast %154 : vector<1x64xi1> to vector<8x64xi1>
    %156 = vector.broadcast %153 : bf16 to vector<8x64xbf16>
    %157 = arith.select %155, %150, %156 : vector<8x64xi1>, vector<8x64xbf16>
    %cst_55 = arith.constant 0.000000e+00 : bf16
    %158 = vector.broadcast %cst_55 : bf16 to vector<8x1xbf16>
    %159 = vector.extract_strided_slice %117 {offsets = [0, 0], sizes = [8, 63], strides = [1, 1]} : vector<8x64xbf16> to vector<8x63xbf16>
    %160 = tpu.concatenate %158, %159 in 1 : vector<8x1xbf16>, vector<8x63xbf16> -> vector<8x64xbf16>
    %c1_i32_56 = arith.constant 1 : i32
    %161 = vector.broadcast %c1_i32_56 : i32 to vector<1x64xi32>
    %162 = arith.cmpi sge, %134, %161 : vector<1x64xi32>
    %cst_57 = arith.constant 0.000000e+00 : f32
    %163 = arith.truncf %cst_57 : f32 to bf16
    %164 = vector.shape_cast %162 : vector<1x64xi1> to vector<1x64xi1>
    %165 = vector.broadcast %164 : vector<1x64xi1> to vector<8x64xi1>
    %166 = vector.broadcast %163 : bf16 to vector<8x64xbf16>
    %167 = arith.select %165, %160, %166 : vector<8x64xi1>, vector<8x64xbf16>
    %cst_58 = arith.constant 0.000000e+00 : bf16
    %168 = vector.broadcast %cst_58 : bf16 to vector<8x1xbf16>
    %169 = vector.extract_strided_slice %117 {offsets = [0, 1], sizes = [8, 63], strides = [1, 1]} : vector<8x64xbf16> to vector<8x63xbf16>
    %170 = tpu.concatenate %169, %168 in 1 : vector<8x63xbf16>, vector<8x1xbf16> -> vector<8x64xbf16>
    %c7_i32_59 = arith.constant 7 : i32
    %171 = vector.broadcast %c7_i32_59 : i32 to vector<1x64xi32>
    %172 = arith.cmpi slt, %134, %171 : vector<1x64xi32>
    %cst_60 = arith.constant 0.000000e+00 : f32
    %173 = arith.truncf %cst_60 : f32 to bf16
    %174 = vector.shape_cast %172 : vector<1x64xi1> to vector<1x64xi1>
    %175 = vector.broadcast %174 : vector<1x64xi1> to vector<8x64xi1>
    %176 = vector.broadcast %173 : bf16 to vector<8x64xbf16>
    %177 = arith.select %175, %170, %176 : vector<8x64xi1>, vector<8x64xbf16>
    %cst_61 = arith.constant 0.000000e+00 : bf16
    %178 = vector.broadcast %cst_61 : bf16 to vector<8x7xbf16>
    %179 = vector.extract_strided_slice %117 {offsets = [0, 7], sizes = [8, 57], strides = [1, 1]} : vector<8x64xbf16> to vector<8x57xbf16>
    %180 = tpu.concatenate %179, %178 in 1 : vector<8x57xbf16>, vector<8x7xbf16> -> vector<8x64xbf16>
    %c1_i32_62 = arith.constant 1 : i32
    %181 = vector.broadcast %c1_i32_62 : i32 to vector<1x64xi32>
    %182 = arith.cmpi sge, %134, %181 : vector<1x64xi32>
    %cst_63 = arith.constant 0.000000e+00 : f32
    %183 = arith.truncf %cst_63 : f32 to bf16
    %184 = vector.shape_cast %182 : vector<1x64xi1> to vector<1x64xi1>
    %185 = vector.broadcast %184 : vector<1x64xi1> to vector<8x64xi1>
    %186 = vector.broadcast %183 : bf16 to vector<8x64xbf16>
    %187 = arith.select %185, %180, %186 : vector<8x64xi1>, vector<8x64xbf16>
    %cst_64 = arith.constant 0.000000e+00 : bf16
    %188 = vector.broadcast %cst_64 : bf16 to vector<8x8xbf16>
    %189 = vector.extract_strided_slice %117 {offsets = [0, 8], sizes = [8, 56], strides = [1, 1]} : vector<8x64xbf16> to vector<8x56xbf16>
    %190 = tpu.concatenate %189, %188 in 1 : vector<8x56xbf16>, vector<8x8xbf16> -> vector<8x64xbf16>
    %cst_65 = arith.constant 0.000000e+00 : bf16
    %191 = vector.broadcast %cst_65 : bf16 to vector<8x9xbf16>
    %192 = vector.extract_strided_slice %117 {offsets = [0, 9], sizes = [8, 55], strides = [1, 1]} : vector<8x64xbf16> to vector<8x55xbf16>
    %193 = tpu.concatenate %192, %191 in 1 : vector<8x55xbf16>, vector<8x9xbf16> -> vector<8x64xbf16>
    %c7_i32_66 = arith.constant 7 : i32
    %194 = vector.broadcast %c7_i32_66 : i32 to vector<1x64xi32>
    %195 = arith.cmpi slt, %134, %194 : vector<1x64xi32>
    %cst_67 = arith.constant 0.000000e+00 : f32
    %196 = arith.truncf %cst_67 : f32 to bf16
    %197 = vector.shape_cast %195 : vector<1x64xi1> to vector<1x64xi1>
    %198 = vector.broadcast %197 : vector<1x64xi1> to vector<8x64xi1>
    %199 = vector.broadcast %196 : bf16 to vector<8x64xbf16>
    %200 = arith.select %198, %193, %199 : vector<8x64xi1>, vector<8x64xbf16>
    %201 = tpu.concatenate %144, %147, %157, %167, %117, %177, %187, %190, %200 in 0 : vector<8x64xbf16>, vector<8x64xbf16>, vector<8x64xbf16>, vector<8x64xbf16>, vector<8x64xbf16>, vector<8x64xbf16>, vector<8x64xbf16>, vector<8x64xbf16>, vector<8x64xbf16> -> vector<72x64xbf16>
    %c0_68 = arith.constant 0 : index
    %c0_69 = arith.constant 0 : index
    %202 = vector.load %arg9[%c0_68, %c0_69] : memref<8x72xbf16, #tpu.memory_space<vmem>>, vector<8x72xbf16>
    %cst_70 = arith.constant dense<0.000000e+00> : vector<8x64xf32>
    %203 = tpu.matmul %202, %201, %cst_70 {dimension_numbers = #tpu.dot_dimension_numbers<[1], [0], [0], [1], [0, 0, 1, 1], [], []>} : vector<8x72xbf16>, vector<72x64xbf16>, vector<8x64xf32> -> vector<8x64xf32>
    %204 = arith.addf %106, %203 : vector<8x64xf32>
    %c0_71 = arith.constant 0 : index
    %c0_72 = arith.constant 0 : index
    %205 = vector.load %arg10[%c0_71, %c0_72] : memref<8x1xf32, #tpu.memory_space<vmem>>, vector<8x1xf32>
    %206 = vector.broadcast %205 : vector<8x1xf32> to vector<8x64xf32>
    %207 = arith.addf %204, %206 : vector<8x64xf32>
    %c0_73 = arith.constant 0 : index
    %c0_74 = arith.constant 0 : index
    %208 = vector.load %arg11[%c0_73, %c0_74] : memref<8x1xf32, #tpu.memory_space<vmem>>, vector<8x1xf32>
    %209 = vector.broadcast %208 : vector<8x1xf32> to vector<8x64xf32>
    %210 = arith.mulf %207, %209 : vector<8x64xf32>
    %c0_75 = arith.constant 0 : index
    %c0_76 = arith.constant 0 : index
    %211 = vector.load %arg12[%c0_75, %c0_76] : memref<8x1xf32, #tpu.memory_space<vmem>>, vector<8x1xf32>
    %212 = vector.broadcast %211 : vector<8x1xf32> to vector<8x64xf32>
    %213 = arith.addf %210, %212 : vector<8x64xf32>
    %cst_77 = arith.constant 0.000000e+00 : f32
    %214 = vector.broadcast %cst_77 : f32 to vector<8x64xf32>
    %215 = arith.maximumf %213, %214 : vector<8x64xf32>
    %c0_78 = arith.constant 0 : index
    %c0_79 = arith.constant 0 : index
    %216 = vector.load %arg13[%c0_78, %c0_79] : memref<1x8xf32, #tpu.memory_space<vmem>>, vector<1x8xf32>
    %cst_80 = arith.constant dense<0.000000e+00> : vector<1x64xf32>
    %217 = tpu.matmul %216, %215, %cst_80 {dimension_numbers = #tpu.dot_dimension_numbers<[1], [0], [0], [1], [0, 0, 1, 1], [], []>} : vector<1x8xf32>, vector<8x64xf32>, vector<1x64xf32> -> vector<1x64xf32>
    %c0_81 = arith.constant 0 : index
    %c0_82 = arith.constant 0 : index
    %218 = vector.load %arg14[%c0_81, %c0_82] : memref<1x1xf32, #tpu.memory_space<vmem>>, vector<1x1xf32>
    %219 = vector.broadcast %218 : vector<1x1xf32> to vector<1x64xf32>
    %220 = arith.addf %217, %219 : vector<1x64xf32>
    %221 = vector.broadcast %220 : vector<1x64xf32> to vector<8x64xf32>
    %222 = arith.mulf %221, %108 : vector<8x64xf32>
    %c0_83 = arith.constant 0 : index
    %c0_84 = arith.constant 0 : index
    %c0_85 = arith.constant 0 : index
    %223 = vector.load %arg15[%c0_83, %c0_84, %c0_85] : memref<1x8x64xf32, #tpu.memory_space<vmem>>, vector<1x8x64xf32>
    %224 = vector.shape_cast %223 : vector<1x8x64xf32> to vector<8x64xf32>
    %225 = vector.shape_cast %222 : vector<8x64xf32> to vector<1x8x64xf32>
    tpu.vector_store %arg15[%c0_83, %c0_84, %c0_85], %225 {strides = array<i32>} : memref<1x8x64xf32, #tpu.memory_space<vmem>>, vector<1x8x64xf32>,
    return
  }
  func.func @transform_0(%arg0: i32) -> (i32, i32, i32) {
    %c0_i32 = arith.constant 0 : i32
    %c0_i32_0 = arith.constant 0 : i32
    %c0_i32_1 = arith.constant 0 : i32
    return %arg0, %c0_i32, %c0_i32_0 : i32, i32, i32
  }
  func.func @transform_1(%arg0: i32) -> (i32, i32, i32) {
    %c0_i32 = arith.constant 0 : i32
    %c0_i32_0 = arith.constant 0 : i32
    %c0_i32_1 = arith.constant 0 : i32
    return %arg0, %c0_i32, %c0_i32_0 : i32, i32, i32
  }
  func.func @transform_2(%arg0: i32) -> (i32, i32) {
    %c0_i32 = arith.constant 0 : i32
    %c0_i32_0 = arith.constant 0 : i32
    %c0_i32_1 = arith.constant 0 : i32
    return %c0_i32, %c0_i32_0 : i32, i32
  }
  func.func @transform_3(%arg0: i32) -> (i32, i32) {
    %c0_i32 = arith.constant 0 : i32
    %c0_i32_0 = arith.constant 0 : i32
    %c0_i32_1 = arith.constant 0 : i32
    return %c0_i32, %c0_i32_0 : i32, i32
  }
  func.func @transform_4(%arg0: i32) -> (i32, i32) {
    %c0_i32 = arith.constant 0 : i32
    %c0_i32_0 = arith.constant 0 : i32
    %c0_i32_1 = arith.constant 0 : i32
    return %c0_i32, %c0_i32_0 : i32, i32
  }
  func.func @transform_5(%arg0: i32) -> (i32, i32) {
    %c0_i32 = arith.constant 0 : i32
    %c0_i32_0 = arith.constant 0 : i32
    %c0_i32_1 = arith.constant 0 : i32
    return %c0_i32, %c0_i32_0 : i32, i32
  }
  func.func @transform_6(%arg0: i32) -> (i32, i32) {
    %c0_i32 = arith.constant 0 : i32
    %c0_i32_0 = arith.constant 0 : i32
    %c0_i32_1 = arith.constant 0 : i32
    return %c0_i32, %c0_i32_0 : i32, i32
  }
  func.func @transform_7(%arg0: i32) -> (i32, i32) {
    %c0_i32 = arith.constant 0 : i32
    %c0_i32_0 = arith.constant 0 : i32
    %c0_i32_1 = arith.constant 0 : i32
    return %c0_i32, %c0_i32_0 : i32, i32
  }
  func.func @transform_8(%arg0: i32) -> (i32, i32) {
    %c0_i32 = arith.constant 0 : i32
    %c0_i32_0 = arith.constant 0 : i32
    %c0_i32_1 = arith.constant 0 : i32
    return %c0_i32, %c0_i32_0 : i32, i32
  }
  func.func @transform_9(%arg0: i32) -> (i32, i32) {
    %c0_i32 = arith.constant 0 : i32
    %c0_i32_0 = arith.constant 0 : i32
    %c0_i32_1 = arith.constant 0 : i32
    return %c0_i32, %c0_i32_0 : i32, i32
  }
  func.func @transform_10(%arg0: i32) -> (i32, i32) {
    %c0_i32 = arith.constant 0 : i32
    %c0_i32_0 = arith.constant 0 : i32
    %c0_i32_1 = arith.constant 0 : i32
    return %c0_i32, %c0_i32_0 : i32, i32
  }
  func.func @transform_11(%arg0: i32) -> (i32, i32) {
    %c0_i32 = arith.constant 0 : i32
    %c0_i32_0 = arith.constant 0 : i32
    %c0_i32_1 = arith.constant 0 : i32
    return %c0_i32, %c0_i32_0 : i32, i32
  }
  func.func @transform_12(%arg0: i32) -> (i32, i32) {
    %c0_i32 = arith.constant 0 : i32
    %c0_i32_0 = arith.constant 0 : i32
    %c0_i32_1 = arith.constant 0 : i32
    return %c0_i32, %c0_i32_0 : i32, i32
  }
  func.func @transform_13(%arg0: i32) -> (i32, i32) {
    %c0_i32 = arith.constant 0 : i32
    %c0_i32_0 = arith.constant 0 : i32
    %c0_i32_1 = arith.constant 0 : i32
    return %c0_i32, %c0_i32_0 : i32, i32
  }
  func.func @transform_14(%arg0: i32) -> (i32, i32, i32) {
    %c0_i32 = arith.constant 0 : i32
    %c0_i32_0 = arith.constant 0 : i32
    %c0_i32_1 = arith.constant 0 : i32
    return %arg0, %c0_i32, %c0_i32_0 : i32, i32, i32
  }
}

</mosaic_0001>

<bundles_post_ra>
// kernel: tpu_custom_call.1
= control target key start
LH: loop header
LB: loop body
LE: loop exit
PB: predicated region body
PF: predicated region fallthrough
CT: control target
= control target key end

     0   :  { %s1786_s0 = inlined_call_operand.vmem [shape: f32[2,4,256], index: 0, kind: input, shape index: {}]   ;;  %s1787_s1 = inlined_call_operand.vmem [shape: f32[2,8,64], index: 1, kind: input, shape index: {}]   ;;  %s1788_s2 = inlined_call_operand.vmem [shape: f32[4,1], index: 2, kind: input, shape index: {}]   ;;  %s1789_s3 = inlined_call_operand.vmem [shape: f32[4,1], index: 3, kind: input, shape index: {}]   ;;  %s1790_s4 = inlined_call_operand.vmem [shape: bf16[8,36], index: 4, kind: input, shape index: {}]   ;;  %s1791_s5 = inlined_call_operand.vmem [shape: f32[256,64], index: 5, kind: input, shape index: {}]   ;;  %s1792_s6 = inlined_call_operand.vmem [shape: f32[8,1], index: 6, kind: input, shape index: {}]   ;;  %s1793_s7 = inlined_call_operand.vmem [shape: f32[8,1], index: 7, kind: input, shape index: {}]   ;;  %s1794_s8 = inlined_call_operand.vmem [shape: bf16[8,72], index: 8, kind: input, shape index: {}]   ;;  %s1795_s9 = inlined_call_operand.vmem [shape: f32[8,1], index: 9, kind: input, shape index: {}]   ;;  %s1796_s10 = inlined_call_operand.vmem [shape: f32[8,1], index: 10, kind: input, shape index: {}]   ;;  %s1797_s11 = inlined_call_operand.vmem [shape: f32[8,1], index: 11, kind: input, shape index: {}]   ;;  %s1798_s12 = inlined_call_operand.vmem [shape: f32[1,8], index: 12, kind: input, shape index: {}]   ;;  %s1799_s13 = inlined_call_operand.<no memory space> [shape: f32[1,1], index: 13, kind: input, shape index: {}]   ;;  %s1800_s14 = inlined_call_operand.hbm [shape: f32[2,8,64], index: 14, kind: output, shape index: {}]  }
   0x1   :  { %1805 = sst [smem:[#allocation6_spill]] %s1786_s0  ;;  %v19_v0 = vstv %s1799_s13 }
   0x2   :  { %1806 = sst [smem:[#allocation7_spill]] %s1787_s1  ;;  %20 = vst [vmem:[#allocation2] sm:$0x1] %v19_v0 }
   0x3   :  { %1807 = sst [smem:[#allocation8_spill]] %s1788_s2 }
   0x4   :  { %21 = vsyncpa [#allocation4], 0 }
   0x5   :  { %23 = vsyncpa [#allocation4 + $0x1], 0  ;;  %s1409_s15 = smov 0   ;;  %s1411_s16 = smov 0  }
   0x6   :  { %s1413_s17 = smov 0   ;;  %s1415_s18 = smov 0  }
   0x7 LB: > { %s1430_s13 = sadd.s32 4294967295, %s1313_s18   ;;  %s1166_s19 = sadd.s32 4294967294, %s1313_s18   ;;  %s1313_s18 = sphi %s1415_s18, %s1831_s18   ;;  %s1309_s17 = sphi %s1413_s17, %s1830_s17   ;;  %s1305_s16 = sphi %s1411_s16, %s1829_s16   ;;  %s1301_s15 = sphi %s1409_s15, %s1828_s15  }
   0x8   : > { %s1434_s20 = sadd.s32 1, %s1313_s18   ;;  %s340_s21 = sadd.s32 1, %s1309_s17 }
   0x9   : > { %s337_s22 = ssub.s32 %s1313_s18, %s1434_s20  ;;  %p350_p0 = scmp.ne.s32.totalorder %s1309_s17, %s1305_s16 }
   0xa   : > { %p338_p1 = scmp.eq.s32.totalorder %s337_s22, 0  ;;  %p351_p2 = scmp.eq.s32.totalorder %s1430_s13, 1 }
   0xb   : > { %p356_p3 = scmp.ne.s32.totalorder %s1305_s16, %s1301_s15  ;;  %p357_p4 = scmp.eq.s32.totalorder %s1166_s19, 1 }
   0xc   : > { %s1445_s23 = scalar_select %p338_p1, %s1309_s17, %s340_s21  }
   0xd   : > { %p1447_p5 = por %p351_p2, %p350_p0  ;;  %p1451_p6 = por %p357_p4, %p356_p3 }
   0xe   : > { %p1169_p7 = scmp.ge.s32.totalorder %s1313_s18, 1  ;;  %p426_p8 = scmp.lt.s32.totalorder %s1313_s18, 3 }
  0x10   : > { %p427_p9 = pnand %p1169_p7, %p426_p8 }
  0x11   : > { %s1810_s2 = sld [smem:[#allocation8_spill]] (!%p427_p9)  ;;  %p476_p10 = scmp.lt.s32.totalorder (!%p427_p9), %s1430_s13, 1 }
  0x12   : > { %430 = sbr.rel (%p427_p9) target bundleno = 934 (0x3a6), region = 76  ;;  %s1811_s0 = sld [smem:[#allocation6_spill]] (!%p427_p9) }
  0x13   : > { %s1317_s27 = smov (!%p427_p9), 113   ;;  %s1318_s28 = smov (!%p427_p9), 111  }
  0x14   : > { %s1803_s29 = smov (!%p427_p9), 127   ;;  %s1802_s21 = smov (!%p427_p9), 112  }
  0x15   : > { %s1321_s22 = smov (!%p427_p9), 15   ;;  %s1821_s1 = sld [smem:[#allocation7_spill]] (!%p427_p9) }
  0x17   : > { %v489_v1 = vld [vmem:[%s1810_s2] sm:$0xf]  ;;  %v1315_v2 = vmov 0   ;;  %s1468_s30 = scalar_select %p476_p10, %s1430_s13, 1  ;;  %v1316_v4 = vmov 839922192   ;;  %v519_v24 = vlaneseq }
  0x18   : > { %1238 = vset.pattern.permute.xlu0 %v1315_v2  ;;  %1239 = vset.pattern.permute.xlu1 %v1315_v2  ;;  %v500_v3 = vld [vmem:[%s1789_s3] sm:$0xf]  ;;  %v495_v5 = vunpack.c.l.s4 %v1316_v4  ;;  %v575_v32 = vunpack.c.l.b16 %v1315_v2  ;;  %v576_v33 = vunpack.c.h.b16 %v1315_v2  ;;  %vm687_vm8 = vcmask 908288  }
  0x19   : > { %492 = vperm.xlu0 %1238, %v489_v1   ;;  %1250 = vset.pattern.permute.xlu2 %v1315_v2  ;;  %s1801_s19 = sshll.u32 %s1468_s30, 3  ;;  %v847_v22 = vld [vmem:[%s1792_s6] sm:$0xff]  ;;  %v1508_v25 = vand.u32 127, %v519_v24  ;;  %vm718_vm10 = vcmask 1041408   ;;  %vm652_vm14 = vcmask 1039360  }
  0x1a   : > { %v496_v7 = vunpack.c.0.s8 %v495_v5  ;;  %s480_s26 = scalar_lea.vmem %s1811_s0, %s1801_s19  ;;  %s1323_s19 = smov 16   ;;  %v854_v23 = vld [vmem:[%s1793_s7] sm:$0xff] }
  0x1b   : > { %v488_v9 = vld [vmem:[%s480_s26] sm:$0xff]  ;;  %s1322_s26 = smov 17   ;;  %v521_v26 = vadd.s32 128, %v1508_v25  ;;  %v526_v27 = vand.u32 15, %v1508_v25  ;;  %s1820_s0 = sshll.u32 %s1468_s30, 3 }
  0x1d   : > { %v533_v28 = vand.u32 15, %v521_v26  ;;  %vm609_vm0 = vcmp.lt.s32.totalorder %v526_v27, 15  ;;  %vm563_vm11 = vcmp.ge.s32.totalorder %v526_v27, 1 }
  0x1f   : > { %vm610_vm1 = vcmp.lt.s32.totalorder %v533_v28, 15  ;;  %vm564_vm12 = vcmp.ge.s32.totalorder %v533_v28, 1 }
  0x20   : > { %vm615_vm2 = vmpackc.low %vm610_vm1, %vm609_vm0  ;;  %vm678_vm1 = vcmask 916480  }
  0x21   : > { %503 = vperm.xlu0 %1238, %v500_v3   ;;  %v616_v29 = vsel %vm615_vm2, 65537, %v1315_v2  ;;  %vm569_vm13 = vmpackc.low %vm564_vm12, %vm563_vm11  ;;  %vm730_vm11 = vcmask 1045504   ;;  %vm593_vm12 = vcmask 130048  }
  0x22   : > { %v617_v30 = vperm.slane %v616_v29, 0  ;;  %v618_v31 = vperm.slane %v616_v29, 4  ;;  %v570_v49 = vsel %vm569_vm13, 65537, %v1315_v2  ;;  %vm602_vm13 = vcmask 121856  }
  0x23   : > { %v572_v51 = vperm.slane %v570_v49, 4  ;;  %v571_v52 = vperm.slane %v570_v49, 0 }
  0x24   : > { %v619_v34 = vunpack.c.l.b16 %v617_v30  ;;  %v620_v35 = vunpack.c.h.b16 %v617_v30  ;;  %v626_v37 = vunpack.c.l.b16 %v618_v31  ;;  %v627_v38 = vunpack.c.h.b16 %v618_v31 }
  0x25   : > { %v580_v54 = vunpack.c.l.b16 %v572_v51  ;;  %v581_v55 = vunpack.c.h.b16 %v572_v51  ;;  %v573_v57 = vunpack.c.l.b16 %v571_v52  ;;  %v574_v58 = vunpack.c.h.b16 %v571_v52 }
  0x26   : > { %vm623_vm3 = vcmp.ne.s32.totalorder %v619_v34, %v575_v32  ;;  %vm624_vm4 = vcmp.ne.s32.totalorder %v620_v35, %v576_v33  ;;  %vm630_vm5 = vcmp.ne.s32.totalorder %v626_v37, %v575_v32  ;;  %vm631_vm6 = vcmp.ne.s32.totalorder %v627_v38, %v576_v33 }
  0x27   : > { %vm1515_vm7 = vmpackc.low %vm624_vm4, %vm623_vm3  ;;  %vm584_vm15 = vcmp.ne.s32.totalorder %v580_v54, %v575_v32  ;;  %vm585_vm0 = vcmp.ne.s32.totalorder %v581_v55, %v576_v33  ;;  %vm577_vm2 = vcmp.ne.s32.totalorder %v573_v57, %v575_v32  ;;  %vm578_vm3 = vcmp.ne.s32.totalorder %v574_v58, %v576_v33  ;;  %v753_v58 = vld [vmem:[%s1790_s4] sm:$0xf] }
  0x28   : > { %vm1519_vm9 = vmpackc.low %vm631_vm6, %vm630_vm5  ;;  %vm665_vm4 = vcmask 924672  }
  0x29   : > { %vm1536_vm5 = vmpackc.low %vm585_vm0, %vm584_vm15  ;;  %vm555_vm15 = vcmask 138240   ;;  %vm639_vm0 = vcmask 7168  }
  0x2a   : > { %vm1542_vm6 = vmpackc.low %vm578_vm3, %vm577_vm2  ;;  %vm913_vm3 = vcmask 515072  }
  0x8b   : > { %v493_v6 = vpop.permute.xlu0 %492 }
  0x8c   : > { %v497_v8 = vperm.slane %v493_v6, %v496_v7  ;;  %v816_v6 = vld [vmem:[%s1791_s5 + $0x10] sm:$0xff] }
  0x8e   : > { %v499_v11 = vmul.f32 %v497_v8, %v488_v9 }
  0x93   : > { %v504_v10 = vpop.permute.xlu0 %503 }
  0x94   : > { %v508_v12 = vperm.slane %v504_v10, %v496_v7 }
  0x96   : > { %v510_v13 = vadd.f32 %v508_v12, %v499_v11 }
  0x98   : > { %v511_v14 = vmax.f32 %v510_v13, 0.0 }
  0x9a   : > { %513 = vst [vmem:[#allocation1] ss:$2 sm:$0xff] %v511_v14 }
  0xa1   : > { %v514_v15 = vld.sshfl [vmem:[#allocation1] sm:$0xff pattern:$0x75316420]  ;;  %v515_v16 = vld.sshfl [vmem:[#allocation1 + $0x8] sm:$0xff pattern:$0x75316420] }
  0xa2   : > { %v518_v17 = vpack.c.bf16 %v515_v16, %v514_v15 }
  0xa4   : > { %v547_v18 = vunpack.c.l.b16 %v518_v17  ;;  %v548_v20 = vunpack.c.h.b16 %v518_v17 }
  0xa6   : > { %v1476_v19 = vpack.c.b16 %v547_v18, %v547_v18  ;;  %v1482_v21 = vpack.c.b16 %v548_v20, %v548_v20 }
  0xa8   : > { %661 = vrot.lane.b32.xlu0 %v1476_v19, %s1317_s27  ;;  %683 = vrot.lane.b32.xlu2 %v1476_v19, %s1318_s28 }
  0xa9   : > { %648 = vrot.lane.b32.xlu1 %v1476_v19, %s1803_s29 }
  0xb0   : > { %676 = vrot.lane.b32.xlu0 %v1482_v21, %s1802_s21  ;;  %685 = vrot.lane.b32.xlu2 %v1482_v21, %s1318_s28  ;;  %s1325_s28 = smov 120  }
  0xb1   : > { %650 = vrot.lane.b32.xlu1 %v1482_v21, %s1803_s29  ;;  %s1328_s29 = smov 8  }
  0xb8   : > { %598 = vrot.lane.b32.xlu0 %v1476_v19, %s1321_s22  ;;  %674 = vrot.lane.b32.xlu2 %v1476_v19, %s1802_s21  ;;  %s1324_s21 = smov 1  }
  0xb9   : > { %663 = vrot.lane.b32.xlu1 %v1482_v21, %s1317_s27  ;;  %s1326_s27 = smov 119  }
  0xc0   : > { %553 = vrot.lane.b32.xlu0 %v1482_v21, %s1322_s26  ;;  %591 = vrot.lane.b32.xlu2 %v1482_v21, %s1323_s19 }
  0xc1   : > { %589 = vrot.lane.b32.xlu1 %v1476_v19, %s1323_s19  ;;  %s1327_s19 = smov 9  }
  0xc8   : > { %850 = vperm.xlu0 %1238, %v847_v22   ;;  %551 = vrot.lane.b32.xlu2 %v1476_v19, %s1322_s26 }
  0xc9   : > { %600 = vrot.lane.b32.xlu1 %v1482_v21, %s1321_s22  ;;  %s484_s22 = scalar_lea.vmem %s1821_s1, %s1820_s0  ;;  %s1822_s0 = smov 127  }
  0xca   : > { %v1579_v52 = vld [vmem:[%s484_s22] sm:$0xff]  ;;  %s1329_s1 = smov 121  }
  0xd0   : > { %637 = vrot.lane.b32.xlu2 %v1482_v21, %s1324_s21 }
  0xd1   : > { %635 = vrot.lane.b32.xlu1 %v1476_v19, %s1324_s21 }
  0xd9   : > { %857 = vperm.xlu1 %1239, %v854_v23  }
 0x102   : > { %v684_v36 = vpop.permute.xlu2 %683 }
 0x10a   : > { %v686_v41 = vpop.permute.xlu2 %685 }
 0x10b   : > { %v688_v42 = vsel %vm687_vm8, %v684_v36, %v686_v41  ;;  %v692_v43 = vsel %vm687_vm8, %v686_v41, 0  ;;  %vm725_vm8 = vcmask 1043456  }
 0x10c   : > { %v694_v44 = vsel %vm1515_vm7, %v688_v42, 0  ;;  %v695_v45 = vsel %vm1519_vm9, %v692_v43, 0 }
 0x10d   : > { %v759_v46 = vsel %vm718_vm10, %v694_v44, 0  ;;  %v762_v47 = vsel %vm718_vm10, %v695_v45, 0 }
 0x10e   : > { %769 = vmatpush.bf16.msra.mxu0 %v759_v46  ;;  %782 = vmatpush.bf16.msra.mxu1 %v762_v47 }
 0x112   : > { %v675_v56 = vpop.permute.xlu2 %674 }
 0x11a   : > { %v662_v50 = vpop.permute.xlu0 %661  ;;  %v592_v13 = vpop.permute.xlu2 %591 }
 0x11b   : > { %v649_v48 = vpop.permute.xlu1 %648 }
 0x122   : > { %v677_v63 = vpop.permute.xlu0 %676  ;;  %v552_v27 = vpop.permute.xlu2 %551 }
 0x123   : > { %v651_v53 = vpop.permute.xlu1 %650  ;;  %v679_v4 = vsel %vm678_vm1, %v675_v56, %v677_v63  ;;  %v682_v5 = vsel %vm678_vm1, %v677_v63, 0  ;;  %v561_v32 = vsel %vm555_vm15, 0, %v552_v27 }
 0x124   : > { %v653_v59 = vsel %vm652_vm14, %v649_v48, %v651_v53  ;;  %v657_v60 = vsel %vm652_vm14, %v651_v53, 0  ;;  %v716_v14 = vrot.slane %v679_v4, 2  ;;  %v717_v15 = vrot.slane %v682_v5, 2  ;;  %v1045_v4 = vld [vmem:[#allocation2] sm:$0x1] }
 0x125   : > { %v659_v61 = vsel %vm1515_vm7, %v653_v59, 0  ;;  %v660_v62 = vsel %vm1519_vm9, %v657_v60, 0  ;;  %v587_v38 = vsel %vm1542_vm6, %v561_v32, 0  ;;  %v867_v5 = vand.u32 7, %v1508_v25 }
 0x126   : > { %v709_v1 = vrot.slane %v659_v61, 6  ;;  %v710_v2 = vrot.slane %v660_v62, 6 }
 0x128   : > { %v739_v16 = vsel %vm718_vm10, %v1476_v19, %v709_v1  ;;  %v742_v17 = vsel %vm718_vm10, %v1482_v21, %v710_v2  ;;  %v1022_v2 = vld [vmem:[%s1795_s9] sm:$0xff] }
 0x12a   : > { %v599_v24 = vpop.permute.xlu0 %598  ;;  %v638_v41 = vpop.permute.xlu2 %637 }
 0x12b   : > { %v664_v3 = vpop.permute.xlu1 %663  ;;  %v607_v30 = vsel %vm602_vm13, 0, %v599_v24 }
 0x12c   : > { %v666_v7 = vsel %vm665_vm4, %v662_v50, %v664_v3  ;;  %v670_v8 = vsel %vm665_vm4, %v664_v3, 0  ;;  %v633_v36 = vsel %vm1515_vm7, %v607_v30, 0  ;;  %vm754_vm7 = vcmask 293888   ;;  %v1029_v3 = vld [vmem:[%s1796_s10] sm:$0xff]  ;;  %v840_v30 = vld [vmem:[%s1791_s5 + $0xd0] sm:$0xff] }
 0x12d   : > { %v672_v9 = vsel %vm1542_vm6, %v666_v7, 0  ;;  %v673_v10 = vsel %vm1536_vm5, %v670_v8, 0  ;;  %v701_v46 = vrot.slane %v633_v36, 4  ;;  %vm927_vm4 = vcmask 457728  }
 0x12e   : > { %v713_v11 = vrot.slane %v672_v9, 4  ;;  %v714_v12 = vrot.slane %v673_v10, 4 }
 0x130   : > { %v744_v18 = vsel %vm725_vm8, %v739_v16, %v713_v11  ;;  %v746_v20 = vsel %vm725_vm8, %v742_v17, %v714_v12  ;;  %v829_v16 = vld [vmem:[%s1791_s5 + $0x78] sm:$0xff] }
 0x131   : > { %v748_v22 = vsel %vm730_vm11, %v744_v18, %v716_v14  ;;  %v751_v23 = vsel %vm730_vm11, %v746_v20, %v717_v15  ;;  %v845_v17 = vld [vmem:[%s1791_s5 + $0xf8] sm:$0xff]  ;;  %v828_v18 = vld [vmem:[%s1791_s5 + $0x70] sm:$0xff]  ;;  %982 = vmatpush.msra.mxu3 %v829_v16  ;;  %v961_v16 = vld [vmem:[%s1794_s8] sm:$0xf] }
 0x132   : > { %770 = vmatpush.bf16.msra.mxu0 %v748_v22  ;;  %783 = vmatpush.bf16.msra.mxu1 %v751_v23  ;;  %v554_v19 = vpop.permute.xlu0 %553  ;;  %v844_v20 = vld [vmem:[%s1791_s5 + $0xf0] sm:$0xff]  ;;  %v827_v23 = vld [vmem:[%s1791_s5 + $0x68] sm:$0xff] }
 0x133   : > { %v590_v26 = vpop.permute.xlu1 %589  ;;  %v556_v33 = vsel %vm555_vm15, %v552_v27, %v554_v19  ;;  %983 = vmatpush.msra.mxu3 %v828_v18  ;;  %v842_v27 = vld [vmem:[%s1791_s5 + $0xe0] sm:$0xff]  ;;  %v841_v19 = vld [vmem:[%s1791_s5 + $0xd8] sm:$0xff]  ;;  %vm962_vm15 = vcmask 588800   ;;  %v815_v18 = vld [vmem:[%s1791_s5 + $0x8] sm:$0xff] }
 0x134   : > { %v597_v29 = vsel %vm593_vm12, 0, %v590_v26  ;;  %v594_v31 = vsel %vm593_vm12, %v590_v26, %v592_v13  ;;  %v588_v42 = vsel %vm1536_vm5, %v556_v33, 0  ;;  %v826_v26 = vld [vmem:[%s1791_s5 + $0x60] sm:$0xff]  ;;  %vm880_vm12 = vcmask 72704  }
 0x135   : > { %v697_v34 = vrot.slane %v597_v29, 6  ;;  %v698_v37 = vrot.slane %v594_v31, 6  ;;  %984 = vmatpush.msra.mxu3 %v827_v23  ;;  %v830_v23 = vld [vmem:[%s1791_s5 + $0x80] sm:$0xff] }
 0x137   : > { %v721_v45 = vsel %vm718_vm10, %v587_v38, %v697_v34  ;;  %v724_v51 = vsel %vm718_vm10, %v588_v42, %v698_v37  ;;  %vm932_vm10 = vcmask 449536   ;;  %985 = vmatpush.msra.mxu3 %v826_v26  ;;  %v823_v34 = vld [vmem:[%s1791_s5 + $0x48] sm:$0xff] }
 0x138   : > { %v727_v54 = vsel %vm725_vm8, %v721_v45, %v701_v46  ;;  %v821_v46 = vld [vmem:[%s1791_s5 + $0x38] sm:$0xff] }
 0x13a   : > { %v851_v53 = vpop.permute.xlu0 %850 }
 0x13b   : > { %v601_v28 = vpop.permute.xlu1 %600  ;;  %v853_v59 = vmul.f32 %v851_v53, %v1579_v52 }
 0x13c   : > { %v603_v21 = vsel %vm602_vm13, %v599_v24, %v601_v28  ;;  %v843_v24 = vld [vmem:[%s1791_s5 + $0xe8] sm:$0xff]  ;;  %v825_v28 = vld [vmem:[%s1791_s5 + $0x58] sm:$0xff]  ;;  %vm896_vm13 = vcmask 56320  }
 0x13d   : > { %v634_v35 = vsel %vm1519_vm9, %v603_v21, 0  ;;  %vm900_vm9 = vcmp.lt.s32.totalorder %v867_v5, 7  ;;  %v824_v21 = vld [vmem:[%s1791_s5 + $0x50] sm:$0xff]  ;;  %986 = vmatpush.msra.mxu3 %v825_v28 }
 0x13e   : > { %v702_v43 = vrot.slane %v634_v35, 4  ;;  %vm1603_vm2 = vmpackc.low %vm900_vm9, %vm900_vm9  ;;  %v839_v35 = vld [vmem:[%s1791_s5 + $0xc8] sm:$0xff] }
 0x13f   : > { %987 = vmatpush.msra.mxu3 %v824_v21 }
 0x140   : > { %v729_v55 = vsel %vm725_vm8, %v724_v51, %v702_v43  ;;  %v822_v43 = vld [vmem:[%s1791_s5 + $0x40] sm:$0xff] }
 0x141   : > { %988 = vmatpush.msra.mxu3 %v823_v34 }
 0x143   : > { %v636_v44 = vpop.permute.xlu1 %635  ;;  %989 = vmatpush.msra.mxu3 %v822_v43 }
 0x144   : > { %v640_v40 = vsel %vm639_vm0, %v636_v44, %v638_v41  ;;  %v644_v39 = vsel %vm639_vm0, 0, %v636_v44  ;;  %v838_v44 = vld [vmem:[%s1791_s5 + $0xc0] sm:$0xff] }
 0x145   : > { %v646_v47 = vsel %vm1542_vm6, %v644_v39, 0  ;;  %v647_v48 = vsel %vm1536_vm5, %v640_v40, 0  ;;  %vm920_vm5 = vcmask 465920   ;;  %990 = vmatpush.msra.mxu3 %v821_v46 }
 0x146   : > { %v705_v49 = vrot.slane %v646_v47, 2  ;;  %v706_v50 = vrot.slane %v647_v48, 2  ;;  %v837_v47 = vld [vmem:[%s1791_s5 + $0xb8] sm:$0xff] }
 0x148   : > { %v732_v56 = vsel %vm730_vm11, %v727_v54, %v705_v49  ;;  %v735_v57 = vsel %vm730_vm11, %v729_v55, %v706_v50  ;;  %v820_v49 = vld [vmem:[%s1791_s5 + $0x30] sm:$0xff]  ;;  %vm891_vm11 = vcmask 64512  }
 0x149   : > { %771 = vmatpush.bf16.msra.mxu0 %v732_v56  ;;  %784 = vmatpush.bf16.msra.mxu1 %v735_v57  ;;  %v836_v50 = vld [vmem:[%s1791_s5 + $0xb0] sm:$0xff]  ;;  %v819_v56 = vld [vmem:[%s1791_s5 + $0x28] sm:$0xff] }
 0x14a   : > { %v835_v57 = vld [vmem:[%s1791_s5 + $0xa8] sm:$0xff]  ;;  %991 = vmatpush.msra.mxu3 %v820_v49 }
 0x14b   : > { %v858_v60 = vpop.permute.xlu1 %857 }
 0x14c   : > { %v860_v61 = vadd.f32 %v858_v60, %v853_v59  ;;  %1174 = vmatmul.msk.bf16.vlgmr.msra.gmra.mxu0 %vm754_vm7, %v753_v58  ;;  %1175 = vmatmul.msk.bf16.vlgmr.msra.gmra.mxu1 %vm754_vm7, %v753_v58 }
 0x14d   : > { %1002 = vmatpush.msrb.mxu0 %v845_v17  ;;  %992 = vmatpush.msra.mxu3 %v819_v56  ;;  %v832_v17 = vld [vmem:[%s1791_s5 + $0x90] sm:$0xff] }
 0x14e   : > { %v861_v62 = vmax.f32 %v860_v61, 0.0  ;;  %v818_v61 = vld [vmem:[%s1791_s5 + $0x20] sm:$0xff] }
 0x14f   : > { %1003 = vmatpush.msrb.mxu0 %v844_v20  ;;  %993 = vmatpush.msra.mxu3 %v818_v61  ;;  %v831_v20 = vld [vmem:[%s1791_s5 + $0x88] sm:$0xff] }
 0x150   : > { %v1589_v63 = vpack.c.bf16 %v861_v62, %v861_v62  ;;  %v834_v62 = vld [vmem:[%s1791_s5 + $0xa0] sm:$0xff] }
 0x151   : > { %1004 = vmatpush.msrb.mxu0 %v843_v24  ;;  %v1036_v24 = vld [vmem:[%s1797_s11] sm:$0xff] }
 0x152   : > { %v876_v0 = vunpack.c.l.b16 %v1589_v63 }
 0x153   : > { %1005 = vmatpush.msrb.mxu0 %v842_v27 }
 0x154   : > { %v877_v1 = vpack.c.b16 %v876_v0, %v876_v0 }
 0x155   : > { %1006 = vmatpush.msrb.mxu0 %v841_v19 }
 0x156   : > { %925 = vrot.lane.b32.xlu1 %v877_v1, %s1325_s28  ;;  %930 = vrot.lane.b32.xlu0 %v877_v1, %s1326_s27  ;;  %s473_s27 = sand.u32 1, %s1305_s16  }
 0x157   : > { %1007 = vmatpush.msrb.mxu0 %v840_v30 }
 0x159   : > { %1008 = vmatpush.msrb.mxu0 %v839_v35 }
 0x15b   : > { %1009 = vmatpush.msrb.mxu0 %v838_v44 }
 0x15d   : > { %1010 = vmatpush.msrb.mxu0 %v837_v47 }
 0x15e   : > { %905 = vrot.lane.b32.xlu1 %v877_v1, %s1324_s21  ;;  %911 = vrot.lane.b32.xlu0 %v877_v1, %s1822_s0  ;;  %s1330_s21 = smov 7  }
 0x15f   : > { %1011 = vmatpush.msrb.mxu0 %v836_v50 }
 0x161   : > { %1012 = vmatpush.msrb.mxu0 %v835_v57 }
 0x163   : > { %1013 = vmatpush.msrb.mxu0 %v834_v62 }
 0x166   : > { %878 = vrot.lane.b32.xlu1 %v877_v1, %s1327_s19  ;;  %889 = vrot.lane.b32.xlu0 %v877_v1, %s1328_s29  ;;  %s1170_s19 = sshll.u32 %s473_s27, 3  ;;  %s1179_s29 = sshll.u32 %s1430_s13, 3 }
 0x167   : > { %s475_s26 = scalar_lea.vmem [#allocation3], %s1170_s19  ;;  %s1271_s19 = scalar_lea.hbm %s1800_s14, 16 }
 0x16e   : > { %1025 = vperm.xlu0 %1238, %v1022_v2   ;;  %1032 = vperm.xlu1 %1239, %v1029_v3   ;;  %v817_v3 = vld [vmem:[%s1791_s5 + $0x18] sm:$0xff] }
 0x16f   : > { %994 = vmatpush.msra.mxu3 %v817_v3 }
 0x171   : > { %995 = vmatpush.msra.mxu3 %v816_v6 }
 0x173   : > { %996 = vmatpush.msra.mxu3 %v815_v18 }
 0x176   : > { %1048 = vperm.xlu0 %1238, %v1045_v4   ;;  %v833_v4 = vld [vmem:[%s1791_s5 + $0x98] sm:$0xff] }
 0x177   : > { %1014 = vmatpush.msrb.mxu0 %v833_v4 }
 0x179   : > { %1015 = vmatpush.msrb.mxu0 %v832_v17 }
 0x17b   : > { %1016 = vmatpush.msrb.mxu0 %v831_v20 }
 0x17d   : > { %1017 = vmatpush.msrb.mxu0 %v830_v23 }
 0x1c8   : > { %v931_v7 = vpop.permute.xlu0 %930  ;;  %v926_v22 = vpop.permute.xlu1 %925 }
 0x1c9   : > { %v934_v8 = vsel %vm932_vm10, %v931_v7, 0  ;;  %v773_v9 = vpop.f32.mrf.mxu0  ;;  %v786_v10 = vpop.f32.mrf.mxu1  ;;  %v929_v39 = vsel %vm927_vm4, %v926_v22, 0  ;;  %v814_v22 = vld [vmem:[%s1791_s5] sm:$0xff] }
 0x1ca   : > { %v1240_v11 = vpack.i.bf16 %v786_v10, %v773_v9  ;;  %v936_v12 = vsel %vm1603_vm2, %v934_v8, 0  ;;  %v944_v51 = vrot.slane %v929_v39, 4  ;;  %997 = vmatpush.msra.mxu3 %v814_v22 }
 0x1cb   : > { %v967_v13 = vsel %vm725_vm8, %v936_v12, 0 }
 0x1cc   : > { %1241 = vrot.lane.b32.xlu2 %v1240_v11, %s1822_s0  ;;  %972 = vmatpush.bf16.msra.mxu2 %v967_v13  ;;  %s1825_s0 = smov 112  }
 0x1d0   : > { %v912_v33 = vpop.permute.xlu0 %911  ;;  %v906_v38 = vpop.permute.xlu1 %905 }
 0x1d1   : > { %v775_v14 = vpop.f32.mrf.mxu0  ;;  %v788_v15 = vpop.f32.mrf.mxu1  ;;  %v915_v40 = vsel %vm913_vm3, %v912_v33, 0  ;;  %v908_v58 = vsel %vm639_vm0, 0, %v906_v38 }
 0x1d2   : > { %v917_v48 = vsel %vm1603_vm2, %v915_v40, 0 }
 0x1d3   : > { %v942_v59 = vrot.slane %v917_v48, 4 }
 0x1d4   : > { %918 = vrot.lane.b32.xlu2 %v877_v1, %s1329_s1  ;;  %s1092_s1 = sshll.u32 %s475_s26, 4  ;;  %s1093_s1 = int_to_ptr.vmem [resolvable:$true] %s1092_s1 }
 0x1d8   : > { %v890_v0 = vpop.permute.xlu0 %889  ;;  %v879_v2 = vpop.permute.xlu1 %878 }
 0x1d9   : > { %v893_v7 = vsel %vm891_vm11, 0, %v890_v0 }
 0x1da   : > { %v938_v13 = vrot.slane %v893_v7, 4 }
 0x1dc   : > { %894 = vrot.lane.b32.xlu2 %v877_v1, %s1330_s21  ;;  %s1080_s21 = scalar_lea.sflag [#allocation4], %s473_s27 }
 0x1e0   : > { %v1033_v43 = vpop.permute.xlu1 %1032 }
 0x226   : > { %v1242_v29 = vpop.permute.xlu2 %1241 }
 0x227   : > { %v1244_v31 = vunpack.i.h.bf16 %v1242_v29  ;;  %v1243_v32 = vunpack.i.l.bf16 %v1242_v29 }
 0x229   : > { %v799_v36 = vsel %vm652_vm14, %v1244_v31, 0.0  ;;  %v796_v37 = vsel %vm652_vm14, %v1243_v32, %v1244_v31  ;;  %vm884_vm14 = vcmp.ge.s32.totalorder %v867_v5, 1  ;;  %v955_v5 = vsel %vm725_vm8, %v1589_v63, %v942_v59 }
 0x22a   : > { %v1655_v41 = vmax.f32 %v786_v10, %v799_v36  ;;  %v1657_v42 = vmax.f32 %v773_v9, %v796_v37  ;;  %vm1684_vm6 = vmpackc.low %vm884_vm14, %vm884_vm14  ;;  %v882_v10 = vsel %vm880_vm12, 0, %v879_v2  ;;  %v1026_v37 = vpop.permute.xlu0 %1025 }
 0x22b   : > { %v910_v1 = vsel %vm1684_vm6, %v908_v58, 0  ;;  %v888_v63 = vsel %vm1684_vm6, %v882_v10, 0 }
 0x22c   : > { %v1245_v45 = vpack.i.bf16 %v1655_v41, %v1657_v42  ;;  %v940_v9 = vrot.slane %v910_v1, 4  ;;  %v947_v15 = vsel %vm725_vm8, %v888_v63, %v938_v13 }
 0x22e   : > { %1246 = vrot.lane.b32.xlu2 %v1245_v45, %s1825_s0  ;;  %v919_v25 = vpop.permute.xlu2 %918  ;;  %s1090_s0 = scalar_lea.hbm %s1800_s14, %s1179_s29 }
 0x22f   : > { %v922_v54 = vsel %vm920_vm5, %v919_v25, 0  ;;  %s1094_s2 = sshll.u32 %s1090_s0, 4  ;;  %s1095_s2 = int_to_ptr.hbm [resolvable:$true] %s1094_s2 }
 0x230   : > { %v924_v55 = vsel %vm1684_vm6, %v922_v54, 0  ;;  %s1265_s13 = sshra.s32 %s1095_s2, 4  ;;  %s1266_s13 = int_to_ptr.hbm [resolvable:$true] %s1265_s13 }
 0x231   : > { %v959_v60 = vsel %vm725_vm8, %v924_v55, %v944_v51  ;;  %s1267_s28 = scalar_lea.hbm %s1266_s13, 8  ;;  %p1272_p0 = scmp.lt.s32.totalorder %s1266_s13, %s1800_s14 }
 0x232   : > { %973 = vmatpush.bf16.msra.mxu2 %v959_v60  ;;  %p1268_p11 = scmp.ne.s32.totalorder %s1266_s13, %s1267_s28  ;;  %p1273_p1 = scmp.lt.s32.totalorder %s1271_s19, %s1267_s28 }
 0x234   : > { %p1269_p12 = pnand %p1268_p11, %p1447_p5  ;;  %p1274_p2 = por %p1273_p1, %p1272_p0 }
 0x236   : > { %v895_v8 = vpop.permute.xlu2 %894  ;;  %974 = vmatpush.bf16.msra.mxu2 %v955_v5  ;;  %1039 = vperm.xlu2 %1250, %v1036_v24   ;;  %p1270_p13 = pneg %p1269_p12 }
 0x237   : > { %v898_v11 = vsel %vm896_vm13, 0, %v895_v8 }
 0x238   : > { %v904_v12 = vsel %vm1603_vm2, %v898_v11, 0  ;;  %p1275_p3 = pnand %p1274_p2, %p1270_p13 }
 0x239   : > { %v951_v14 = vsel %vm725_vm8, %v904_v12, %v940_v9 }
 0x23a   : > { %975 = vmatpush.bf16.msra.mxu2 %v951_v14 }
 0x23e   : > { %976 = vmatpush.bf16.msra.mxu2 %v947_v15 }
 0x241   : > { %1176 = vmatmul.msk.bf16.vlgmr.msra.gmra.mxu2 %vm962_vm15, %v961_v16 }
 0x288   : > { %v1247_v26 = vpop.permute.xlu2 %1246 }
 0x289   : > { %v1249_v27 = vunpack.i.h.bf16 %v1247_v26  ;;  %v1248_v28 = vunpack.i.l.bf16 %v1247_v26 }
 0x28b   : > { %v811_v19 = vsel %vm678_vm1, %v1249_v27, 0.0  ;;  %v808_v29 = vsel %vm678_vm1, %v1248_v28, %v1249_v27  ;;  %vm1077_vm1 = vcmask 523264  }
 0x28c   : > { %v812_v21 = vmax.f32 %v1657_v42, %v808_v29  ;;  %v813_v30 = vmax.f32 %v1655_v41, %v811_v19  ;;  %v1044_v41 = vld [vmem:[%s1798_s12] sm:$0x1]  ;;  %v1049_v42 = vpop.permute.xlu0 %1048 }
 0x28d   : > { %v1051_v46 = vperm.slane %v1049_v42, 0 }
 0x28e   : > { %998 = vmatmul.f32.vlgmr.msra.gmra.mxu3 %v812_v21  ;;  %1018 = vmatmul.f32.vlgmr.msrb.gmra.mxu0 %v813_v30 }
 0x290   : > { %v1040_v44 = vpop.permute.xlu2 %1039 }
 0x2c4   : > { %v978_v31 = vpop.f32.mrf.mxu2 }
 0x2cc   : > { %v980_v32 = vpop.f32.mrf.mxu2 }
 0x30b   : > { %v1019_v35 = vpop.f32.mrf.mxu0 }
 0x311   : > { %v999_v33 = vpop.f32.mrf.mxu3 }
 0x312   : > { %v1000_v34 = vadd.f32 %v999_v33, %v978_v31 }
 0x314   : > { %v1020_v36 = vadd.f32 %v1019_v35, %v1000_v34 }
 0x316   : > { %v1028_v38 = vadd.f32 %v1026_v37, %v1020_v36 }
 0x318   : > { %v1035_v40 = vmul.f32 %v1033_v43, %v1028_v38 }
 0x31a   : > { %v1042_v39 = vadd.f32 %v1040_v44, %v1035_v40 }
 0x31c   : > { %v1043_v45 = vmax.f32 %v1042_v39, 0.0 }
 0x31e   : > { %1070 = vmatpush.msrb.mxu1 %v1043_v45 }
 0x31f   : > { %1177 = vmatmul.msk.f32.vlgmr.msrb.gmra.mxu1 %vm891_vm11, %v1044_v41 }
 0x39c   : > { %v1072_v47 = vpop.f32.mrf.mxu1 }
 0x39d   : > { %v1073_v48 = vadd.f32 %v1072_v47, %v1051_v46 }
 0x39f   : > { %v1075_v25 = vperm.slane %v1073_v48, 0 }
 0x3a1   : > { %v1076_v49 = vmul.f32 %v1075_v25, %v1579_v52 }
 0x3a3   : > { %1078 = vst.msk [vmem:[%s475_s26] sm:$0xff] %vm1077_vm1, %v1076_v49 }
 0x3a4   : > { %1278 = shalt.err (!%p1275_p3)
}
 0x3a5   : > { %1183 = dma.vmem_to_hbm [thread:$0]  (%p1447_p5), %s1093_s1, 128, %s1095_s2, %s1080_s21  }
 0x3a6 PF: > { %p1189_p4 = scmp.ge.s32.totalorder %s1313_s18, 2  ;;  %s1106_s27 = sand.u32 1, %s1301_s15  }
 0x3a7   : > { %s1107_s26 = scalar_lea.sflag [#allocation4], %s1106_s27 }
 0x3a8   : > { %p1186_p7 = pnand %p1189_p4, %p1451_p6 }
 0x3aa   : > { %p1187_p8 = pneg %p1186_p7 }
 0x3ac   : > { %1296 = dma.done.wait (%p1187_p8), %s1107_s26, 128  }
 0x3ad   : > { %1298 = vsyncadd (%p1187_p8), %s1107_s26, 4294967168  ;;  %p26_p9 = scmp.ge.s32.totalorder %s1434_s20, 4   ;;  %s1828_s15 = smov %s1305_s16 }
 0x3ae   : > { %s1829_s16 = smov %s1309_s17  ;;  %s1830_s17 = smov %s1445_s23 }
 0x3af   : > { %s1831_s18 = smov %s1434_s20  ;;  %28 = sbr.rel (!%p26_p9) target bundleno = 7 (0x7), region = 114 }
 0x3b4   :  { %1113 = vsyncpa [#allocation4], 1 }
 0x3b5   :  { %1115 = vsyncpa [#allocation4 + $0x1], 1 }

</bundles_post_ra>
